<compile_context>
chip_gen: v7x
topology: tpu7x:2x2x1
jax: 0.10.0
libtpu: 0.0.40
codegen_flags: <defaults>
</compile_context>

<pallas_src>
import jax
import jax.numpy as jnp
import numpy as np
from jax.experimental import pallas as pl
from jax.experimental.pallas import tpu as pltpu

# ---- static problem sizes (small, consistent with the module) ----
B = 8            # batch
CIN = 4          # Conv1d in_channels
L = 64           # sequence length
COUT = 16        # Conv1d out_channels
K = 24           # Conv1d kernel_size
LOUT = L - K + 1                     # 41
H1 = 32          # hidden width of first Linear
EPS = 1e-5       # BatchNorm1d default eps

N = B * LOUT                         # 328 im2col columns (lane axis)
TN = 128                             # lane-tile width per grid step
N_PAD = pl.cdiv(N, TN) * TN          # 384
KC_PAD = 128                         # K*CIN = 96 padded to 128 (contraction)
B_PAD = 128                          # batch padded to a full lane vreg


def deepbind_kernel(x_ref, wconv_ref, pool_ref, w1_ref, small_ref,
                    out_ref, pooled_acc):
    # x_ref:     (KC_PAD, TN)    bf16  transposed im2col tile (this grid step)
    # wconv_ref: (COUT, KC_PAD)  bf16  conv weight as a matrix (VMEM-resident)
    # pool_ref:  (TN, B_PAD)     bf16  0/1 length-sum selection tile
    # w1_ref:    (H1, COUT)      bf16  fc1 weight, eval-BN and 1/LOUT folded in
    # small_ref: (H1, 128)       f32   packed small params:
    #              col 0, rows[:COUT] = conv bias
    #              col 1, rows[:H1]   = fc1 bias (BN-folded)
    #              col 2, rows[:H1]   = fc2 weight (as a column)
    #              col 3, row 0       = fc2 bias
    # out_ref:   (1, B_PAD)      f32   lane-dense sigmoid outputs (lanes [:B])
    # pooled_acc:(COUT, B_PAD)   f32   per-batch length-sum accumulator
    i = pl.program_id(0)

    @pl.when(i == 0)
    def _():
        pooled_acc[...] = jnp.zeros_like(pooled_acc)

    # --- Conv1d as a transposed im2col matmul (bf16 operands, f32 acc) ---
    h = jnp.dot(wconv_ref[...], x_ref[...],
                preferred_element_type=jnp.float32)          # (COUT, TN) f32

    # --- conv bias + ReLU on dense vregs ---
    conv_b = small_ref[0:COUT, 0:1]                          # (COUT, 1)
    h = jnp.maximum(h + conv_b, 0.0)

    # --- length-sum contribution of this lane tile (0/1 matrix, exact bf16;
    #     h cast to bf16 intentionally: MXU-native, documented precision) ---
    pooled_acc[...] += jnp.dot(h.astype(jnp.bfloat16), pool_ref[...],
                               preferred_element_type=jnp.float32)

    @pl.when(i == pl.num_programs(0) - 1)
    def _():
        fc1_b = small_ref[0:H1, 1:2]                         # (H1, 1)
        fc2_w = small_ref[0:H1, 2:3]                         # (H1, 1)
        fc2_b = small_ref[0:1, 3:4]                          # (1, 1)

        # --- Linear(16,32): eval-BN affine and 1/LOUT mean already folded ---
        z1 = jnp.dot(w1_ref[...], pooled_acc[...].astype(jnp.bfloat16),
                     preferred_element_type=jnp.float32) + fc1_b   # (H1, B_PAD)
        z1 = jnp.maximum(z1, 0.0)

        # --- Dropout(p=0.5): identity in eval mode ---

        # --- Linear(32,1) as a sublane (XLU) reduction + Sigmoid (EUP) ---
        z2 = jnp.sum(z1 * fc2_w, axis=0, keepdims=True) + fc2_b    # (1, B_PAD)
        out_ref[...] = jax.nn.sigmoid(z2).astype(out_ref.dtype)


def deepbind_forward(x_ncw, params):
    """x_ncw: (B, CIN, L) like PyTorch NCW. Returns (B, 1) float32."""
    x = x_ncw.astype(jnp.float32)                            # (B, CIN, L)

    # Gather-free im2col unfold: K static slices, rows ordered (c*K + k).
    slabs = [x[:, :, k:k + LOUT] for k in range(K)]          # K x (B,CIN,LOUT)
    xs = jnp.stack(slabs, axis=0)                            # (K,B,CIN,LOUT)
    x_unf_T = jnp.transpose(xs, (2, 0, 1, 3)).reshape(CIN * K, N)

    x_pad = jnp.zeros((KC_PAD, N_PAD), jnp.bfloat16)
    x_pad = x_pad.at[:CIN * K, :N].set(x_unf_T.astype(jnp.bfloat16))

    # Conv weight (COUT, CIN, K) -> (COUT, CIN*K), matching the (c,k) order,
    # zero-padded along the contraction to 128.
    wconv_T = jnp.zeros((COUT, KC_PAD), jnp.bfloat16)
    wconv_T = wconv_T.at[:, :CIN * K].set(
        params['conv_w'].reshape(COUT, CIN * K).astype(jnp.bfloat16))

    # 0/1 pool selection matrix (length-sum per batch); pad rows/cols are 0.
    n_idx = np.arange(N_PAD)
    b_idx = np.arange(B_PAD)
    pool_np = (((n_idx[:, None] // LOUT) == b_idx[None, :])
               & (n_idx[:, None] < N)).astype(np.float32)
    pool_T = jnp.asarray(pool_np, jnp.bfloat16)              # exact 0/1 in bf16

    # Fold eval-mode BatchNorm (affine, applied after ReLU, commutes with the
    # linear mean pool) AND the 1/LOUT mean scale into fc1:
    #   z1 = ((sum/LOUT - mean)*s + beta) @ W1 + b1
    #      = sum @ (diag(s) W1 / LOUT) + ((beta - mean*s) @ W1 + b1)
    s = params['bn_gamma'] * jax.lax.rsqrt(params['bn_var'] + EPS)   # (COUT,)
    fc1_w_folded = (s[:, None] * params['fc1_w']) / LOUT             # (COUT,H1)
    fc1_b_folded = ((params['bn_beta'] - params['bn_mean'] * s)
                    @ params['fc1_w'] + params['fc1_b'])             # (H1,)
    w1_T = fc1_w_folded.T.astype(jnp.bfloat16)                       # (H1,COUT)

    # Pack remaining tiny params into one (H1, 128) f32 slab (one DMA).
    small = jnp.zeros((H1, 128), jnp.float32)
    small = small.at[:COUT, 0].set(params['conv_b'])
    small = small.at[:H1, 1].set(fc1_b_folded)
    small = small.at[:H1, 2].set(params['fc2_w'].reshape(H1))
    small = small.at[0, 3].set(params['fc2_b'][0])

    out = pl.pallas_call(
        deepbind_kernel,
        out_shape=jax.ShapeDtypeStruct((1, B_PAD), jnp.float32),
        grid_spec=pltpu.PrefetchScalarGridSpec(
            num_scalar_prefetch=0,
            grid=(N_PAD // TN,),
            in_specs=[
                pl.BlockSpec((KC_PAD, TN), lambda i: (0, i)),    # x tile
                pl.BlockSpec((COUT, KC_PAD), lambda i: (0, 0)),  # conv W (resident)
                pl.BlockSpec((TN, B_PAD), lambda i: (i, 0)),     # pool tile
                pl.BlockSpec((H1, COUT), lambda i: (0, 0)),      # fc1 W (resident)
                pl.BlockSpec((H1, 128), lambda i: (0, 0)),       # small params
            ],
            out_specs=pl.BlockSpec((1, B_PAD), lambda i: (0, 0)),
            scratch_shapes=[pltpu.VMEM((COUT, B_PAD), jnp.float32)],
        ),
        compiler_params=pltpu.CompilerParams(
            dimension_semantics=("arbitrary",)),   # reduction axis (accumulator)
    )(x_pad, wconv_T, pool_T, w1_T, small)

    return out[0, :B][:, None]                               # (B, 1)


def deepbind_reference(x_ncw, params):
    """Pure-JAX f32 reference of the same (eval-mode) forward pass."""
    x = jnp.transpose(x_ncw, (0, 2, 1)).astype(jnp.float32)  # (B, L, CIN)
    wconv = jnp.transpose(params['conv_w'], (2, 1, 0))       # (K, CIN, COUT)
    acc = jnp.zeros((B, LOUT, COUT), jnp.float32)
    for k in range(K):
        acc = acc + jnp.einsum('blc,cf->blf', x[:, k:k + LOUT, :], wconv[k])
    h = jnp.maximum(acc + params['conv_b'], 0.0)
    h = (h - params['bn_mean']) * (params['bn_gamma']
                                   * jax.lax.rsqrt(params['bn_var'] + EPS)) + params['bn_beta']
    pooled = jnp.mean(h, axis=1)
    z1 = jnp.maximum(pooled @ params['fc1_w'] + params['fc1_b'], 0.0)
    return jax.nn.sigmoid(z1 @ params['fc2_w'] + params['fc2_b'])


def init_params(key):
    ks = jax.random.split(key, 8)
    return {
        'conv_w': 0.1 * jax.random.normal(ks[0], (COUT, CIN, K), jnp.float32),
        'conv_b': 0.05 * jax.random.normal(ks[1], (COUT,), jnp.float32),
        'bn_gamma': 1.0 + 0.1 * jax.random.normal(ks[2], (COUT,), jnp.float32),
        'bn_beta': 0.05 * jax.random.normal(ks[3], (COUT,), jnp.float32),
        'bn_mean': 0.05 * jax.random.normal(ks[4], (COUT,), jnp.float32),
        'bn_var': 1.0 + 0.1 * jnp.abs(jax.random.normal(ks[5], (COUT,), jnp.float32)),
        'fc1_w': 0.2 * jax.random.normal(ks[6], (COUT, H1), jnp.float32),
        'fc1_b': jnp.zeros((H1,), jnp.float32),
        'fc2_w': 0.2 * jax.random.normal(ks[7], (H1, 1), jnp.float32),
        'fc2_b': jnp.zeros((1,), jnp.float32),
    }


if __name__ == "__main__":
    key = jax.random.PRNGKey(0)
    k_x, k_p = jax.random.split(key)
    x = jax.random.normal(k_x, (B, CIN, L), jnp.float32)   # PyTorch NCW input
    params = init_params(k_p)

    y = jax.block_until_ready(jax.jit(deepbind_forward)(x, params))
    y_ref = jax.block_until_ready(deepbind_reference(x, params))

    assert y.shape == (B, 1)
    # bf16 MXU operands (incl. the intentional h->bf16 cast before the pool
    # matmul) with f32 accumulation -> slightly loose tolerance, documented.
    np.testing.assert_allclose(np.asarray(y), np.asarray(y_ref),
                               rtol=2e-2, atol=5e-3)

    print("KERNEL_OK")
</pallas_src>

<mosaic_0001>
module attributes {stable_mosaic.version = 11 : i64} {
  func.func @deepbind_kernel(%arg0: i32, %arg1: memref<128x128xbf16, #tpu.memory_space<vmem>>, %arg2: memref<16x128xbf16, #tpu.memory_space<vmem>>, %arg3: memref<128x128xbf16, #tpu.memory_space<vmem>>, %arg4: memref<32x16xbf16, #tpu.memory_space<vmem>>, %arg5: memref<32x128xf32, #tpu.memory_space<vmem>>, %arg6: memref<1x128xf32, #tpu.memory_space<vmem>>, %arg7: memref<16x128xf32, #tpu.memory_space<vmem>>) attributes {dimension_semantics = [#tpu.dimension_semantics<arbitrary>], iteration_bounds = array<i64: 3>, scalar_prefetch = 0 : i64, scratch_operands = 1 : i64, tpu.core_type = #tpu.core_type<tc>, window_params = [{transform_indices = @transform_0, window_bounds = array<i64: 128, 128>}, {pipeline_mode = #tpu.pipeline_mode<synchronous>, transform_indices = @transform_1, window_bounds = array<i64: 16, 128>}, {transform_indices = @transform_2, window_bounds = array<i64: 128, 128>}, {pipeline_mode = #tpu.pipeline_mode<synchronous>, transform_indices = @transform_3, window_bounds = array<i64: 32, 16>}, {pipeline_mode = #tpu.pipeline_mode<synchronous>, transform_indices = @transform_4, window_bounds = array<i64: 32, 128>}, {pipeline_mode = #tpu.pipeline_mode<synchronous>, transform_indices = @transform_5, window_bounds = array<i64: 1, 128>}]} {
    %c0_i32 = arith.constant 0 : i32
    %0 = arith.cmpi eq, %arg0, %c0_i32 : i32
    %1 = arith.extui %0 : i1 to i32
    %c0_i32_0 = arith.constant 0 : i32
    %2 = arith.cmpi ne, %1, %c0_i32_0 : i32
    scf.if %2 {
      %cst_15 = arith.constant 0.000000e+00 : f32
      %20 = vector.broadcast %cst_15 : f32 to vector<16x128xf32>
      %c0_16 = arith.constant 0 : index
      %c0_17 = arith.constant 0 : index
      %21 = vector.load %arg7[%c0_16, %c0_17] : memref<16x128xf32, #tpu.memory_space<vmem>>, vector<16x128xf32>
      tpu.vector_store %arg7[%c0_16, %c0_17], %20 {strides = array<i32>} : memref<16x128xf32, #tpu.memory_space<vmem>>, vector<16x128xf32>,
    } else {
    }
    %c0 = arith.constant 0 : index
    %c0_1 = arith.constant 0 : index
    %3 = vector.load %arg2[%c0, %c0_1] : memref<16x128xbf16, #tpu.memory_space<vmem>>, vector<16x128xbf16>
    %c0_2 = arith.constant 0 : index
    %c0_3 = arith.constant 0 : index
    %4 = vector.load %arg1[%c0_2, %c0_3] : memref<128x128xbf16, #tpu.memory_space<vmem>>, vector<128x128xbf16>
    %cst = arith.constant dense<0.000000e+00> : vector<16x128xf32>
    %5 = tpu.matmul %3, %4, %cst {dimension_numbers = #tpu.dot_dimension_numbers<[1], [0], [0], [1], [0, 0, 1, 1], [], []>} : vector<16x128xbf16>, vector<128x128xbf16>, vector<16x128xf32> -> vector<16x128xf32>
    %c0_4 = arith.constant 0 : index
    %c0_5 = arith.constant 0 : index
    %6 = vector.load %arg5[%c0_4, %c0_5] : memref<32x128xf32, #tpu.memory_space<vmem>>, vector<16x1xf32>
    %7 = vector.broadcast %6 : vector<16x1xf32> to vector<16x128xf32>
    %8 = arith.addf %5, %7 : vector<16x128xf32>
    %cst_6 = arith.constant 0.000000e+00 : f32
    %9 = vector.broadcast %cst_6 : f32 to vector<16x128xf32>
    %10 = arith.maximumf %8, %9 : vector<16x128xf32>
    %c0_7 = arith.constant 0 : index
    %c0_8 = arith.constant 0 : index
    %11 = vector.load %arg7[%c0_7, %c0_8] : memref<16x128xf32, #tpu.memory_space<vmem>>, vector<16x128xf32>
    %12 = arith.truncf %10 : vector<16x128xf32> to vector<16x128xbf16>
    %c0_9 = arith.constant 0 : index
    %c0_10 = arith.constant 0 : index
    %13 = vector.load %arg3[%c0_9, %c0_10] : memref<128x128xbf16, #tpu.memory_space<vmem>>, vector<128x128xbf16>
    %cst_11 = arith.constant dense<0.000000e+00> : vector<16x128xf32>
    %14 = tpu.matmul %12, %13, %cst_11 {dimension_numbers = #tpu.dot_dimension_numbers<[1], [0], [0], [1], [0, 0, 1, 1], [], []>} : vector<16x128xbf16>, vector<128x128xbf16>, vector<16x128xf32> -> vector<16x128xf32>
    %15 = arith.addf %11, %14 : vector<16x128xf32>
    %c0_12 = arith.constant 0 : index
    %c0_13 = arith.constant 0 : index
    %16 = vector.load %arg7[%c0_12, %c0_13] : memref<16x128xf32, #tpu.memory_space<vmem>>, vector<16x128xf32>
    tpu.vector_store %arg7[%c0_12, %c0_13], %15 {strides = array<i32>} : memref<16x128xf32, #tpu.memory_space<vmem>>, vector<16x128xf32>,
    %c2_i32 = arith.constant 2 : i32
    %17 = arith.cmpi eq, %arg0, %c2_i32 : i32
    %18 = arith.extui %17 : i1 to i32
    %c0_i32_14 = arith.constant 0 : i32
    %19 = arith.cmpi ne, %18, %c0_i32_14 : i32
    scf.if %19 {
      %c0_15 = arith.constant 0 : index
      %c1 = arith.constant 1 : index
      %20 = vector.load %arg5[%c0_15, %c1] : memref<32x128xf32, #tpu.memory_space<vmem>>, vector<32x1xf32>
      %c0_16 = arith.constant 0 : index
      %c2 = arith.constant 2 : index
      %21 = vector.load %arg5[%c0_16, %c2] : memref<32x128xf32, #tpu.memory_space<vmem>>, vector<32x1xf32>
      %c0_17 = arith.constant 0 : index
      %c3 = arith.constant 3 : index
      %22 = vector.load %arg5[%c0_17, %c3] : memref<32x128xf32, #tpu.memory_space<vmem>>, vector<1x1xf32>
      %c0_18 = arith.constant 0 : index
      %c0_19 = arith.constant 0 : index
      %23 = vector.load %arg4[%c0_18, %c0_19] : memref<32x16xbf16, #tpu.memory_space<vmem>>, vector<32x16xbf16>
      %c0_20 = arith.constant 0 : index
      %c0_21 = arith.constant 0 : index
      %24 = vector.load %arg7[%c0_20, %c0_21] : memref<16x128xf32, #tpu.memory_space<vmem>>, vector<16x128xf32>
      %25 = arith.truncf %24 : vector<16x128xf32> to vector<16x128xbf16>
      %cst_22 = arith.constant dense<0.000000e+00> : vector<32x128xf32>
      %26 = tpu.matmul %23, %25, %cst_22 {dimension_numbers = #tpu.dot_dimension_numbers<[1], [0], [0], [1], [0, 0, 1, 1], [], []>} : vector<32x16xbf16>, vector<16x128xbf16>, vector<32x128xf32> -> vector<32x128xf32>
      %27 = vector.broadcast %20 : vector<32x1xf32> to vector<32x128xf32>
      %28 = arith.addf %26, %27 : vector<32x128xf32>
      %cst_23 = arith.constant 0.000000e+00 : f32
      %29 = vector.broadcast %cst_23 : f32 to vector<32x128xf32>
      %30 = arith.maximumf %28, %29 : vector<32x128xf32>
      %31 = vector.broadcast %21 : vector<32x1xf32> to vector<32x128xf32>
      %32 = arith.mulf %30, %31 : vector<32x128xf32>
      %cst_24 = arith.constant dense<0.000000e+00> : vector<128xf32>
      %33 = vector.multi_reduction <add>, %32, %cst_24 [0] : vector<32x128xf32> to vector<128xf32>
      %34 = vector.shape_cast %33 : vector<128xf32> to vector<1x128xf32>
      %35 = vector.broadcast %22 : vector<1x1xf32> to vector<1x128xf32>
      %36 = arith.addf %34, %35 : vector<1x128xf32>
      %37 = arith.negf %36 : vector<1x128xf32>
      %38 = math.exp %37 : vector<1x128xf32>
      %cst_25 = arith.constant 1.000000e+00 : f32
      %39 = vector.broadcast %cst_25 : f32 to vector<1x128xf32>
      %40 = arith.addf %39, %38 : vector<1x128xf32>
      %41 = arith.divf %39, %40 : vector<1x128xf32>
      %c0_26 = arith.constant 0 : index
      %c0_27 = arith.constant 0 : index
      %42 = vector.load %arg6[%c0_26, %c0_27] : memref<1x128xf32, #tpu.memory_space<vmem>>, vector<1x128xf32>
      tpu.vector_store %arg6[%c0_26, %c0_27], %41 {strides = array<i32>} : memref<1x128xf32, #tpu.memory_space<vmem>>, vector<1x128xf32>,
    } else {
    }
    return
  }
  func.func @transform_0(%arg0: i32) -> (i32, i32) {
    %c0_i32 = arith.constant 0 : i32
    %c0_i32_0 = arith.constant 0 : i32
    return %c0_i32, %arg0 : i32, i32
  }
  func.func @transform_1(%arg0: i32) -> (i32, i32) {
    %c0_i32 = arith.constant 0 : i32
    %c0_i32_0 = arith.constant 0 : i32
    %c0_i32_1 = arith.constant 0 : i32
    return %c0_i32, %c0_i32_0 : i32, i32
  }
  func.func @transform_2(%arg0: i32) -> (i32, i32) {
    %c0_i32 = arith.constant 0 : i32
    %c0_i32_0 = arith.constant 0 : i32
    return %arg0, %c0_i32 : i32, i32
  }
  func.func @transform_3(%arg0: i32) -> (i32, i32) {
    %c0_i32 = arith.constant 0 : i32
    %c0_i32_0 = arith.constant 0 : i32
    %c0_i32_1 = arith.constant 0 : i32
    return %c0_i32, %c0_i32_0 : i32, i32
  }
  func.func @transform_4(%arg0: i32) -> (i32, i32) {
    %c0_i32 = arith.constant 0 : i32
    %c0_i32_0 = arith.constant 0 : i32
    %c0_i32_1 = arith.constant 0 : i32
    return %c0_i32, %c0_i32_0 : i32, i32
  }
  func.func @transform_5(%arg0: i32) -> (i32, i32) {
    %c0_i32 = arith.constant 0 : i32
    %c0_i32_0 = arith.constant 0 : i32
    %c0_i32_1 = arith.constant 0 : i32
    return %c0_i32, %c0_i32_0 : i32, i32
  }
}

</mosaic_0001>

<bundles_post_ra>
// kernel: deepbind_forward.1
= control target key start
LH: loop header
LB: loop body
LE: loop exit
PB: predicated region body
PF: predicated region fallthrough
CT: control target
= control target key end

     0   :  { %s997_s18 = smov 0   ;;  %s999_s19 = smov 0   ;;  %s1125_s0 = inlined_call_operand.vmem [shape: bf16[128,384], index: 0, kind: input, shape index: {}]   ;;  %s1126_s1 = inlined_call_operand.vmem [shape: bf16[16,128], index: 1, kind: input, shape index: {}]   ;;  %s1127_s2 = inlined_call_operand.vmem [shape: bf16[384,128], index: 2, kind: input, shape index: {}]   ;;  %s1128_s3 = inlined_call_operand.vmem [shape: bf16[32,16], index: 3, kind: input, shape index: {}]   ;;  %s1129_s4 = inlined_call_operand.vmem [shape: f32[32,128], index: 4, kind: input, shape index: {}]   ;;  %s1130_s5 = inlined_call_operand.vmem [shape: f32[1,128], index: 5, kind: output, shape index: {}]  }
   0x1   :  { %s1001_s20 = smov 0  }
   0x2 LB: > { %s1013_s21 = sadd.s32 4294967295, %s958_s20   ;;  %s1016_s22 = sadd.s32 1, %s958_s20   ;;  %s958_s20 = sphi %s1001_s20, %s1133_s20   ;;  %s954_s19 = sphi %s999_s19, %s1132_s19   ;;  %s950_s18 = sphi %s997_s18, %s1131_s18  }
   0x3   : > { %s19_s23 = ssub.s32 %s958_s20, %s1016_s22  ;;  %s22_s24 = sadd.s32 1, %s954_s19 }
   0x4   : > { %p20_p0 = scmp.eq.s32.totalorder %s19_s23, 0  ;;  %p29_p1 = scmp.ne.s32.totalorder %s954_s19, %s950_s18 }
   0x5   : > { %p30_p2 = scmp.eq.s32.totalorder %s958_s20, 0  ;;  %p775_p4 = scmp.ge.s32.totalorder %s958_s20, 3 }
   0x6   : > { %s1025_s25 = scalar_select %p20_p0, %s954_s19, %s22_s24  }
   0x7   : > { %p31_p3 = por %p30_p2, %p29_p1  ;;  %174 = sbr.rel (%p775_p4) target bundleno = 28 (0x1c), region = 28 }
   0xe   : > { %177 = sbr.rel (!%p31_p3) target bundleno = 28 (0x1c), region = 32  ;;  %s179_s26 = sand.u32 (%p31_p3), 1, %s954_s19  }
   0xf   : > { %s777_s27 = sshll.u32 (%p31_p3), %s958_s20, 2  ;;  %s776_s28 = sshll.u32 (%p31_p3), %s179_s26, 6 }
  0x10   : > { %s1033_s6 = scalar_lea.vmem (%p31_p3), %s1125_s0, %s777_s27  ;;  %s181_s7 = scalar_lea.vmem (%p31_p3), [#allocation3], %s776_s28 }
  0x11   : > { %v199_v0 = vld [vmem:[%s1033_s6] sm:$0xf] (%p31_p3)  ;;  %v201_v1 = vld [vmem:[%s1033_s6 + $0xc] sm:$0xf] (%p31_p3)  ;;  %v203_v2 = vld [vmem:[%s1033_s6 + $0x18] sm:$0xf] (%p31_p3) }
  0x12   : > { %200 = vst [vmem:[%s181_s7] sm:$0xf] (%p31_p3), %v199_v0  ;;  %202 = vst [vmem:[%s181_s7 + $0x4] sm:$0xf] (%p31_p3), %v201_v1  ;;  %v205_v3 = vld [vmem:[%s1033_s6 + $0x24] sm:$0xf] (%p31_p3) }
  0x13   : > { %v207_v4 = vld [vmem:[%s1033_s6 + $0x30] sm:$0xf] (%p31_p3)  ;;  %204 = vst [vmem:[%s181_s7 + $0x8] sm:$0xf] (%p31_p3), %v203_v2  ;;  %206 = vst [vmem:[%s181_s7 + $0xc] sm:$0xf] (%p31_p3), %v205_v3 }
  0x14   : > { %208 = vst [vmem:[%s181_s7 + $0x10] sm:$0xf] (%p31_p3), %v207_v4  ;;  %v209_v5 = vld [vmem:[%s1033_s6 + $0x3c] sm:$0xf] (%p31_p3)  ;;  %v211_v6 = vld [vmem:[%s1033_s6 + $0x48] sm:$0xf] (%p31_p3) }
  0x15   : > { %v213_v7 = vld [vmem:[%s1033_s6 + $0x54] sm:$0xf]  ;;  %210 = vst [vmem:[%s181_s7 + $0x14] sm:$0xf] %v209_v5  ;;  %212 = vst [vmem:[%s181_s7 + $0x18] sm:$0xf] %v211_v6 }
  0x16   : > { %214 = vst [vmem:[%s181_s7 + $0x1c] sm:$0xf] %v213_v7  ;;  %v215_v8 = vld [vmem:[%s1033_s6 + $0x60] sm:$0xf]  ;;  %v217_v9 = vld [vmem:[%s1033_s6 + $0x6c] sm:$0xf] }
  0x17   : > { %v219_v10 = vld [vmem:[%s1033_s6 + $0x78] sm:$0xf]  ;;  %216 = vst [vmem:[%s181_s7 + $0x20] sm:$0xf] %v215_v8  ;;  %218 = vst [vmem:[%s181_s7 + $0x24] sm:$0xf] %v217_v9 }
  0x18   : > { %220 = vst [vmem:[%s181_s7 + $0x28] sm:$0xf] %v219_v10  ;;  %v221_v11 = vld [vmem:[%s1033_s6 + $0x84] sm:$0xf]  ;;  %v223_v12 = vld [vmem:[%s1033_s6 + $0x90] sm:$0xf] }
  0x19   : > { %v225_v13 = vld [vmem:[%s1033_s6 + $0x9c] sm:$0xf]  ;;  %222 = vst [vmem:[%s181_s7 + $0x2c] sm:$0xf] %v221_v11  ;;  %224 = vst [vmem:[%s181_s7 + $0x30] sm:$0xf] %v223_v12 }
  0x1a   : > { %226 = vst [vmem:[%s181_s7 + $0x34] sm:$0xf] %v225_v13  ;;  %v227_v14 = vld [vmem:[%s1033_s6 + $0xa8] sm:$0xf]  ;;  %v229_v15 = vld [vmem:[%s1033_s6 + $0xb4] sm:$0xf] }
  0x1b   : > { %228 = vst [vmem:[%s181_s7 + $0x38] sm:$0xf] %v227_v14  ;;  %230 = vst [vmem:[%s181_s7 + $0x3c] sm:$0xf] %v229_v15 }
  0x1c PF: > { %p778_p5 = scmp.ge.s32.totalorder %s958_s20, 1  ;;  %p293_p6 = scmp.lt.s32.totalorder %s958_s20, 4 }
  0x1e   : > { %p294_p7 = pnand %p778_p5, %p293_p6 }
  0x1f   : > { %s300_s8 = sand.u32 (!%p294_p7), 1, %s950_s18   ;;  %s780_s9 = sshll.u32 (!%p294_p7), %s1013_s21, 4 }
  0x20   : > { %297 = sbr.rel (%p294_p7) target bundleno = 797 (0x31d), region = 77  ;;  %s779_s10 = sshll.u32 (!%p294_p7), %s300_s8, 6 }
  0x21   : > { %p328_p8 = scmp.lt.s32.totalorder (!%p294_p7), %s780_s9, 47  ;;  %s1060_s15 = scalar_lea.vmem (!%p294_p7), [#allocation3], %s779_s10 }
  0x22   : > { %p782_p9 = scmp.ne.s32.totalorder (!%p294_p7), %s1013_s21, 0 }
  0x27   : > { %s1135_s9 = smov (!%p328_p8, %s780_s9), 47  ;;  %337 = sbr.rel (%p782_p9) target bundleno = 46 (0x2e), region = 85 }
  0x28   : > { %s781_s11 = sshll.u32 %s1135_s9, 2  ;;  %v960_v16 = vmov (!%p782_p9), 0.0  }
  0x29   : > { %s1058_s14 = scalar_lea.vmem %s1127_s2, %s781_s11  ;;  %338 = vst [vmem:[#allocation2] sm:$0xff] (!%p782_p9), %v960_v16  ;;  %339 = vst [vmem:[#allocation2 + $0x8] sm:$0xff] (!%p782_p9), %v960_v16 }
  0x2e PF: > { %v907_v17 = vld [vmem:[%s1060_s15] sm:$0xff]   ;;  %v961_v18 = vmov 0.0   ;;  %v908_v19 = vld [vmem:[%s1060_s15 + $0x8] sm:$0xff]   ;;  %vm962_vm0 = vmmov 0   ;;  %v963_v20 = vmov 0   ;;  %v909_v21 = vld [vmem:[%s1060_s15 + $0x10] sm:$0xff]  }
  0x2f   : > { %829 = vmatprep.subr.bf16.mxu0 %v961_v18  ;;  %849 = vmatprep.subr.bf16.mxu1 %v961_v18  ;;  %v910_v22 = vld [vmem:[%s1060_s15 + $0x18] sm:$0xff]   ;;  %v358_v23 = vld [vmem:[%s1129_s4] sm:$0xff]  ;;  %v911_v27 = vld [vmem:[%s1060_s15 + $0x20] sm:$0xff]   ;;  %p800_p10 = scmp.ne.s32.totalorder %s1013_s21, 2 }
  0x30   : > { %830 = vmatpush3.bf16.msra.mxu0 %v907_v17  ;;  %845 = vmatprep.mubr.msk.bf16.mxu0 %vm962_vm0, %v961_v18  ;;  %v916_v24 = vld [vmem:[%s1058_s14] sm:$0xff]   ;;  %v359_v25 = vld [vmem:[%s1129_s4 + $0x8] sm:$0xff]  ;;  %v918_v28 = vld [vmem:[%s1058_s14 + $0x10] sm:$0xff]   ;;  %vm625_vm1 = vcmask (!%p800_p10), 130048   ;;  %v964_v61 = vmov (!%p800_p10), 1   ;;  %v965_v3 = vmov (!%p800_p10), 2  }
  0x31   : > { %831 = vmatprep.subr.bf16.mxu0 %v961_v18  ;;  %906 = vset.pattern.permute.xlu0 %v963_v20  ;;  %v917_v26 = vld [vmem:[%s1058_s14 + $0x8] sm:$0xff]   ;;  %v912_v29 = vld [vmem:[%s1060_s15 + $0x28] sm:$0xff]   ;;  %v913_v31 = vld [vmem:[%s1060_s15 + $0x30] sm:$0xff]   ;;  %v966_v5 = vmov (!%p800_p10), 3  }
  0x32   : > { %865 = vmatprep.mubr.msk.bf16.mxu1 %vm962_vm0, %v961_v18  ;;  %362 = vperm.xlu0 %906, %v358_v23   ;;  %v919_v30 = vld [vmem:[%s1058_s14 + $0x18] sm:$0xff]   ;;  %v920_v32 = vld [vmem:[%s1058_s14 + $0x20] sm:$0xff]   ;;  %v914_v33 = vld [vmem:[%s1060_s15 + $0x38] sm:$0xff]  }
  0x33   : > { %850 = vmatpush3.bf16.msra.mxu1 %v916_v24  ;;  %v921_v34 = vld [vmem:[%s1058_s14 + $0x28] sm:$0xff]   ;;  %v915_v35 = vld [vmem:[%s1126_s1] sm:$0xff]   ;;  %v922_v36 = vld [vmem:[%s1058_s14 + $0x30] sm:$0xff]   ;;  %925 = vset.pattern.permute.xlu1 (!%p800_p10), %v964_v61 }
  0x34   : > { %832 = vmatpush3.bf16.msra.mxu0 %v908_v19  ;;  %851 = vmatprep.subr.bf16.mxu1 %v961_v18  ;;  %v923_v37 = vld [vmem:[%s1058_s14 + $0x38] sm:$0xff]   ;;  %v467_v49 = vld [vmem:[#allocation2] sm:$0xff]  ;;  %v468_v51 = vld [vmem:[#allocation2 + $0x8] sm:$0xff] }
  0x35   : > { %833 = vmatprep.subr.bf16.mxu0 %v961_v18  ;;  %v930_v60 = vld [vmem:[%s1128_s3] sm:$0xff] (!%p800_p10)   ;;  %v585_v62 = vld [vmem:[%s1129_s4 + $0x10] sm:$0xff] (!%p800_p10)  ;;  %v931_v63 = vld [vmem:[%s1128_s3 + $0x8] sm:$0xff] (!%p800_p10)  }
  0x36   : > { %367 = vperm.xlu0 %906, %v359_v25   ;;  %v583_v0 = vld [vmem:[%s1129_s4] sm:$0xff] (!%p800_p10)  ;;  %607 = vperm.xlu1 (!%p800_p10), %925, %v585_v62   ;;  %v586_v1 = vld [vmem:[%s1129_s4 + $0x18] sm:$0xff] (!%p800_p10)  ;;  %v584_v2 = vld [vmem:[%s1129_s4 + $0x8] sm:$0xff] (!%p800_p10) }
  0x37   : > { %852 = vmatpush3.bf16.msra.mxu1 %v917_v26  ;;  %v587_v4 = vld [vmem:[%s1129_s4] sm:$0x1] (!%p800_p10) }
  0x38   : > { %834 = vmatpush3.bf16.msra.mxu0 %v909_v21  ;;  %853 = vmatprep.subr.bf16.mxu1 %v961_v18 }
  0x39   : > { %835 = vmatprep.subr.bf16.mxu0 %v961_v18 }
  0x3a   : > { %924 = vset.pattern.permute.xlu0 (!%p800_p10), %v964_v61  ;;  %612 = vperm.xlu1 (!%p800_p10), %925, %v586_v1  }
  0x3b   : > { %854 = vmatpush3.bf16.msra.mxu1 %v918_v28  ;;  %597 = vperm.xlu0 (!%p800_p10), %924, %v583_v0  }
  0x3c   : > { %836 = vmatpush3.bf16.msra.mxu0 %v910_v22  ;;  %855 = vmatprep.subr.bf16.mxu1 %v961_v18 }
  0x3d   : > { %837 = vmatprep.subr.bf16.mxu0 %v961_v18 }
  0x3e   : > { %927 = vset.pattern.permute.xlu1 (!%p800_p10), %v965_v3 }
  0x3f   : > { %856 = vmatpush3.bf16.msra.mxu1 %v919_v30  ;;  %602 = vperm.xlu0 (!%p800_p10), %924, %v584_v2  }
  0x40   : > { %838 = vmatpush3.bf16.msra.mxu0 %v911_v27  ;;  %857 = vmatprep.subr.bf16.mxu1 %v961_v18 }
  0x41   : > { %839 = vmatprep.subr.bf16.mxu0 %v961_v18  ;;  %690 = vperm.xlu1 (!%p800_p10), %927, %v584_v2  }
  0x43   : > { %858 = vmatpush3.bf16.msra.mxu1 %v920_v32  ;;  %926 = vset.pattern.permute.xlu0 (!%p800_p10), %v965_v3 }
  0x44   : > { %840 = vmatpush3.bf16.msra.mxu0 %v912_v29  ;;  %859 = vmatprep.subr.bf16.mxu1 %v961_v18 }
  0x45   : > { %841 = vmatprep.subr.bf16.mxu0 %v961_v18  ;;  %686 = vperm.xlu0 (!%p800_p10), %926, %v583_v0  }
  0x46   : > { %694 = vperm.xlu1 (!%p800_p10), %927, %v585_v62  }
  0x47   : > { %860 = vmatpush3.bf16.msra.mxu1 %v921_v34 }
  0x48   : > { %842 = vmatpush3.bf16.msra.mxu0 %v913_v31  ;;  %861 = vmatprep.subr.bf16.mxu1 %v961_v18 }
  0x49   : > { %843 = vmatprep.subr.bf16.mxu0 %v961_v18  ;;  %698 = vperm.xlu0 (!%p800_p10), %926, %v586_v1  }
  0x4a   : > { %928 = vset.pattern.permute.xlu1 (!%p800_p10), %v966_v5 }
  0x4b   : > { %862 = vmatpush3.bf16.msra.mxu1 %v922_v36  ;;  %716 = vperm.xlu1 (!%p800_p10), %928, %v587_v4  }
  0x4c   : > { %844 = vmatpush3.bf16.msra.mxu0 %v914_v33  ;;  %863 = vmatprep.subr.bf16.mxu1 %v961_v18 }
  0x4d   : > { %929 = vset.pattern.permute.xlu0 (!%p800_p10), %v966_v5 }
  0x4f   : > { %846 = vmatmul.mubr.bf16.vlgmr.msra.gmra.mrb[0].mxu0 %v915_v35  ;;  %864 = vmatpush3.bf16.msra.mxu1 %v923_v37 }
  0x50   : > { %871 = vmatprep.mubr.msk.bf16.mxu0 (!%p800_p10), %vm625_vm1, %v930_v60 }
  0xb1   : > { %v363_v38 = vpop.permute.xlu0 %362 }
  0xb5   : > { %v368_v42 = vpop.permute.xlu0 %367  ;;  %v608_v6 = vpop.permute.xlu1 (!%p800_p10), %607 }
  0xb9   : > { %v613_v8 = vpop.permute.xlu1 (!%p800_p10), %612 }
  0xba   : > { %v598_v7 = vpop.permute.xlu0 (!%p800_p10), %597 }
  0xbe   : > { %v603_v9 = vpop.permute.xlu0 (!%p800_p10), %602 }
  0xc0   : > { %v691_v11 = vpop.permute.xlu1 (!%p800_p10), %690 }
  0xc4   : > { %v687_v16 = vpop.permute.xlu0 (!%p800_p10), %686 }
  0xc5   : > { %v695_v23 = vpop.permute.xlu1 (!%p800_p10), %694 }
  0xc8   : > { %v699_v27 = vpop.permute.xlu0 (!%p800_p10), %698 }
 0x122   : > { %v458_v39 = vpop.f32.mrb[0].mxu0 }
 0x123   : > { %v459_v40 = vadd.f32 %v458_v39, %v363_v38  ;;  %v847_v41 = vpop.f32.mrb[1].mxu0  ;;  %v717_v38 = vpop.permute.xlu1 (!%p800_p10), %716 }
 0x124   : > { %v461_v43 = vpop.f32.mrb[2].mxu0 }
 0x125   : > { %v462_v44 = vadd.f32 %v461_v43, %v368_v42  ;;  %v848_v45 = vpop.f32.mrb[3].mxu0  ;;  %v465_v46 = vmax.f32 %v459_v40, 0.0 }
 0x127   : > { %v466_v47 = vmax.f32 %v462_v44, 0.0 }
 0x129   : > { %v469_v48 = vpack.c.bf16 %v466_v47, %v465_v46 }
 0x12b   : > { %866 = vmatmul.mubr.bf16.vlgmr.msra.gmra.mrb[0].mxu1 %v469_v48 }
 0x1fd   : > { %582 = sbr.rel (%p800_p10) target bundleno = 797 (0x31d), region = 89 }
 0x1fe   : > { %v568_v50 = vpop.f32.mrb[0].mxu1 }
 0x1ff   : > { %v575_v52 = vadd.f32 %v568_v50, %v467_v49  ;;  %v867_v53 = vpop.f32.mrb[1].mxu1 }
 0x200   : > { %v571_v54 = vpop.f32.mrb[2].mxu1 }
 0x201   : > { %577 = vst [vmem:[#allocation2] sm:$0xff] %v575_v52  ;;  %v576_v55 = vadd.f32 %v571_v54, %v468_v51  ;;  %v868_v56 = vpop.f32.mrb[3].mxu1 }
 0x203   : > { %578 = vst [vmem:[#allocation2 + $0x8] sm:$0xff] %v576_v55 }
 0x208   : > { %v592_v57 = vld [vmem:[#allocation2] sm:$0xff] }
 0x20a   : > { %v593_v58 = vld [vmem:[#allocation2 + $0x8] sm:$0xff] }
 0x20b   : > { %v594_v59 = vpack.c.bf16 %v593_v58, %v592_v57 }
 0x20d   : > { %869 = vmatprep.subr.bf16.mxu0 %v594_v59 }
 0x20e   : > { %870 = vmatpush3.bf16.msra.mxu0 %v594_v59 }
 0x211   : > { %872 = vmatmul.mubr.msk.bf16.vlgmr.msra.gmra.mrb[0].mxu0 %vm625_vm1, %v931_v63 }
 0x2e4   : > { %v873_v10 = vpop.f32.mrb[0].mxu0 }
 0x2e5   : > { %v666_v12 = vpop.f32.mrb[1].mxu0  ;;  %v675_v13 = vadd.f32 %v873_v10, %v608_v6 }
 0x2e6   : > { %v667_v14 = vadd.f32 %v666_v12, %v598_v7  ;;  %v874_v15 = vpop.f32.mrb[2].mxu0 }
 0x2e7   : > { %v669_v17 = vpop.f32.mrb[3].mxu0  ;;  %v678_v19 = vadd.f32 %v874_v15, %v613_v8  ;;  %v683_v21 = vmax.f32 %v675_v13, 0.0 }
 0x2e8   : > { %v681_v18 = vmax.f32 %v667_v14, 0.0  ;;  %v670_v20 = vadd.f32 %v669_v17, %v603_v9 }
 0x2e9   : > { %v684_v24 = vmax.f32 %v678_v19, 0.0  ;;  %v703_v28 = vmul.f32 %v695_v23, %v683_v21 }
 0x2ea   : > { %v682_v22 = vmax.f32 %v670_v20, 0.0  ;;  %v701_v25 = vmul.f32 %v687_v16, %v681_v18 }
 0x2eb   : > { %v704_v31 = vmul.f32 %v699_v27, %v684_v24 }
 0x2ec   : > { %v702_v26 = vmul.f32 %v691_v11, %v682_v22 }
 0x2ee   : > { %v705_v29 = vadd.f32 %v702_v26, %v701_v25 }
 0x2f0   : > { %v706_v30 = vadd.f32 %v705_v29, %v703_v28 }
 0x2f2   : > { %v707_v32 = vadd.f32 %v706_v30, %v704_v31 }
 0x2f4   : > { %v708_v33 = vrot.slane %v707_v32, 4 }
 0x2f6   : > { %v709_v34 = vadd.f32 %v708_v33, %v707_v32 }
 0x2f8   : > { %v710_v35 = vrot.slane %v709_v34, 2 }
 0x2fa   : > { %v711_v36 = vadd.f32 %v710_v35, %v709_v34 }
 0x2fc   : > { %v712_v37 = vrot.slane %v711_v36, 1 }
 0x2fe   : > { %v713_v39 = vadd.f32 %v712_v37, %v711_v36 }
 0x300   : > { %v719_v40 = vadd.f32 %v717_v38, %v713_v39 }
 0x302   : > { %v805_v41 = vmul.f32 -1.442695, %v719_v40 }
 0x304   : > { %932 = vpow2.f32 %v805_v41 }
 0x30e   : > { %v933_v42 = vpop.eup %932 }
 0x30f   : > { %v723_v43 = vadd.f32 1.0, %v933_v42 }
 0x311   : > { %934 = vrcp.f32 %v723_v43 }
 0x31b   : > { %v935_v44 = vpop.eup %934 }
 0x31c   : > { %726 = vst [vmem:[%s1130_s5] sm:$0x1] %v935_v44 }
 0x31d PF: > { %p12_p11 = scmp.ge.s32.totalorder %s1016_s22, 5   ;;  %s1131_s18 = smov %s954_s19 }
 0x31e   : > { %s1132_s19 = smov %s1025_s25  ;;  %s1133_s20 = smov %s1016_s22 }
 0x31f   :  { %14 = sbr.rel (!%p12_p11) target bundleno = 2 (0x2), region = 123 }

</bundles_post_ra>
